<compile_context>
chip_gen: v7x
topology: tpu7x:2x2x1
jax: 0.10.0
libtpu: 0.0.40
codegen_flags: <defaults>
</compile_context>

<pallas_src>
import jax
import jax.numpy as jnp
from jax import lax
from jax.experimental import pallas as pl
from jax.experimental.pallas import tpu as pltpu

LANES = 128
SUBLANES = 8


def _round_up(n, m):
    return ((n + m - 1) // m) * m


def _meta_kernel(x_ref, w1_ref, w2_ref, pb_ref, o_ref):
    h1w = w1_ref.shape[1]   # padded hidden1 width (multiple of 128)
    h2w = w2_ref.shape[1]   # padded hidden2 width (multiple of 128)

    # fc1: cast the f32 x tile to bf16 in-register (VPU, hides under the DMA/MXU),
    # bf16 MXU matmul with f32 accumulation, f32 bias + ReLU.
    x = x_ref[...].astype(jnp.bfloat16)
    h1 = jnp.dot(x, w1_ref[...], preferred_element_type=jnp.float32)
    h1 = jnp.maximum(h1 + pb_ref[0:1, :h1w], 0.0)
    # TODO(synk): dropout is identity at inference; training-mode dropout would use
    # pltpu.prng_seed + pltpu.stateful_bernoulli with 1/(1-p) rescale.

    # fc2: bf16 MXU matmul, f32 accumulation, f32 bias + ReLU.
    h2 = jnp.dot(h1.astype(jnp.bfloat16), w2_ref[...],
                 preferred_element_type=jnp.float32)
    h2 = jnp.maximum(h2 + pb_ref[1:2, :h2w], 0.0)

    # Output head (N=1), lane-dense: contract the packed params tile (8, h2w) against
    # h2 (TB, h2w) over the hidden dim.  Row 2 of the result is w3 . h2 -> a (1, TB)
    # logits ROW (the other rows are free MXU filler and are discarded).  f32 MXU
    # pass for head precision; the MXU is otherwise idle at this point.
    head = lax.dot_general(pb_ref[:, :h2w], h2,
                           dimension_numbers=(((1,), (1,)), ((), ())),
                           preferred_element_type=jnp.float32)     # (8, TB)
    logits = head[2:3, :] + pb_ref[3:4, 0:1]                       # + b3 scalar
    o_ref[...] = jax.nn.sigmoid(logits).astype(o_ref.dtype)        # lane-dense store


def prepare_params(w1, b1, w2, b2, w3, b3):
    """One-time host-side prep (hoisted out of the per-call path).

    Pads hidden dims to 128 lanes, casts W1/W2 to bf16, and packs b1 / b2 / w3-row /
    b3 into a single (8, Wp) f32 tile:
        row 0 = b1 (padded), row 1 = b2 (padded), row 2 = w3 row (padded), [3, 0] = b3.
    Zero padding keeps the math exact (padded lanes contribute 0 through ReLU/head).
    """
    F, H1 = w1.shape
    H2 = w2.shape[1]
    H1p = _round_up(H1, LANES)
    H2p = _round_up(H2, LANES)
    Wp = max(H1p, H2p)

    w1p = jnp.zeros((F, H1p), jnp.bfloat16).at[:, :H1].set(w1.astype(jnp.bfloat16))
    w2p = jnp.zeros((H1p, H2p), jnp.bfloat16).at[:H1, :H2].set(w2.astype(jnp.bfloat16))

    pb = jnp.zeros((SUBLANES, Wp), jnp.float32)
    pb = pb.at[0, :H1].set(b1.reshape(-1))
    pb = pb.at[1, :H2].set(b2.reshape(-1))
    pb = pb.at[2, :H2].set(w3.reshape(-1))
    pb = pb.at[3, 0].set(b3.reshape(-1)[0])
    return w1p, w2p, pb


def _pick_batch_tile(B, batch_tile):
    """Adaptive batch tile (review items 2, 3, 6).

    - tiny B (< 256): one 8-row-aligned tile (single grid step);
    - otherwise: lane-aligned (multiple-of-128) tiles chosen to (a) give >= 2 grid
      steps so v7x's two TensorCores both get work, (b) minimise batch padding waste,
      (c) prefer larger tiles (fewer grid steps, better HBM roofline).
      v5e/v6e are single-TC so the extra steps are harmless there.
    """
    if B < 2 * LANES:
        return _round_up(max(B, 1), SUBLANES)
    candidates = [tb for tb in (1024, 512, 384, 256, 128) if tb <= max(batch_tile, LANES)]
    best_key, best_tb = None, None
    for tb in candidates:
        n_steps = (B + tb - 1) // tb
        waste = n_steps * tb - B
        key = (n_steps < 2, waste, -tb)   # prefer >=2 steps, then min waste, then big tile
        if best_key is None or key < best_key:
            best_key, best_tb = key, tb
    return best_tb


def meta_model_forward(x, w1p, w2p, pb, *, batch_tile=512):
    """Forward pass. `x` is (B, F) in the caller's dtype; w1p/w2p/pb from prepare_params."""
    B, F = x.shape
    assert w1p.shape[0] == F, "x feature dim must match prepared w1"
    H1p = w1p.shape[1]
    H2p = w2p.shape[1]
    Wp = pb.shape[1]

    TB = _pick_batch_tile(B, batch_tile)
    n_tiles = (B + TB - 1) // TB
    Bp = n_tiles * TB   # output slab is padded; overhanging x rows read garbage that
                        # is sliced off below (each output row depends only on its own x row).

    out_row = pl.pallas_call(
        _meta_kernel,
        out_shape=jax.ShapeDtypeStruct((1, Bp), jnp.float32),   # lane-dense output slab
        grid=(n_tiles,),
        in_specs=[
            pl.BlockSpec((TB, F), lambda i: (i, 0)),            # batch-tiled activations (no host pad/cast)
            pl.BlockSpec((F, H1p), lambda i: (0, 0)),           # resident bf16 weights
            pl.BlockSpec((H1p, H2p), lambda i: (0, 0)),
            pl.BlockSpec((SUBLANES, Wp), lambda i: (0, 0)),     # packed biases + w3 row + b3
        ],
        out_specs=pl.BlockSpec((1, TB), lambda i: (0, i)),      # unmasked lane-dense stores
        compiler_params=pltpu.CompilerParams(
            dimension_semantics=("parallel",),                   # shards grid across v7x TCs
            vmem_limit_bytes=32 * 1024 * 1024),
    )(x, w1p, w2p, pb)
    return out_row[0, :B].reshape(B, 1)


def init_params(key, input_size, hidden1, hidden2):
    ks = jax.random.split(key, 6)

    def lin(kw, kb, fan_in, fan_out):
        bound = 1.0 / jnp.sqrt(fan_in)
        w = jax.random.uniform(kw, (fan_in, fan_out), jnp.float32, -bound, bound)
        b = jax.random.uniform(kb, (1, fan_out), jnp.float32, -bound, bound)
        return w, b

    w1, b1 = lin(ks[0], ks[1], input_size, hidden1)
    w2, b2 = lin(ks[2], ks[3], hidden1, hidden2)
    w3, b3 = lin(ks[4], ks[5], hidden2, 1)
    return w1, b1, w2, b2, w3, b3


def reference_forward(x, w1, b1, w2, b2, w3, b3):
    # Full-f32 reference.
    h1 = jnp.maximum(x @ w1 + b1, 0.0)
    h2 = jnp.maximum(h1 @ w2 + b2, 0.0)
    return jax.nn.sigmoid(h2 @ w3 + b3)


def reference_forward_mixed(x, w1, b1, w2, b2, w3, b3):
    # Mirrors the kernel's bf16-input / f32-accumulate precision.
    xb = x.astype(jnp.bfloat16)
    w1b = w1.astype(jnp.bfloat16)
    w2b = w2.astype(jnp.bfloat16)
    h1 = jnp.maximum(
        jnp.dot(xb, w1b, preferred_element_type=jnp.float32) + b1, 0.0)
    h2 = jnp.maximum(
        jnp.dot(h1.astype(jnp.bfloat16), w2b, preferred_element_type=jnp.float32) + b2,
        0.0)
    return jax.nn.sigmoid(h2 @ w3 + b3)


if __name__ == "__main__":
    input_size = 32
    hidden1 = 64
    hidden2 = 32
    dropout_rate = 0.3  # identity at inference

    key = jax.random.PRNGKey(0)
    kx, kp, kx2 = jax.random.split(key, 3)
    params = init_params(kp, input_size, hidden1, hidden2)
    prepped = prepare_params(*params)          # one-time host-side weight prep
    fwd = jax.jit(meta_model_forward)

    # --- small batch: single grid step -------------------------------------------
    batch = 8
    x = jax.random.normal(kx, (batch, input_size), jnp.float32)
    out = jax.block_until_ready(fwd(x, *prepped))
    assert out.shape == (batch, 1)
    ref_mixed = reference_forward_mixed(x, *params)
    ref_f32 = reference_forward(x, *params)
    assert jnp.allclose(out, ref_mixed, atol=3e-3, rtol=0.0), \
        float(jnp.max(jnp.abs(out - ref_mixed)))
    assert jnp.allclose(out, ref_f32, atol=2e-2, rtol=0.0), \
        float(jnp.max(jnp.abs(out - ref_f32)))

    # --- ragged larger batch: adaptive lane-aligned tiles, >=2 parallel grid steps,
    # lane-dense output path, padded-tail rows sliced off ---------------------------
    batch2 = 300
    x2 = jax.random.normal(kx2, (batch2, input_size), jnp.float32)
    out2 = jax.block_until_ready(fwd(x2, *prepped))
    assert out2.shape == (batch2, 1)
    ref2_mixed = reference_forward_mixed(x2, *params)
    assert jnp.allclose(out2, ref2_mixed, atol=3e-3, rtol=0.0), \
        float(jnp.max(jnp.abs(out2 - ref2_mixed)))

    print("KERNEL_OK")
</pallas_src>

<mosaic_0001>
module attributes {stable_mosaic.version = 11 : i64} {
  func.func @_meta_kernel(%arg0: i32, %arg1: memref<8x32xf32, #tpu.memory_space<vmem>>, %arg2: memref<32x128xbf16, #tpu.memory_space<vmem>>, %arg3: memref<128x128xbf16, #tpu.memory_space<vmem>>, %arg4: memref<8x128xf32, #tpu.memory_space<vmem>>, %arg5: memref<1x8xf32, #tpu.memory_space<vmem>>) attributes {dimension_semantics = [#tpu.dimension_semantics<parallel>], iteration_bounds = array<i64: 1>, scalar_prefetch = 0 : i64, scratch_operands = 0 : i64, tpu.core_type = #tpu.core_type<tc>, window_params = [{transform_indices = @transform_0, window_bounds = array<i64: 8, 32>}, {pipeline_mode = #tpu.pipeline_mode<synchronous>, transform_indices = @transform_1, window_bounds = array<i64: 32, 128>}, {pipeline_mode = #tpu.pipeline_mode<synchronous>, transform_indices = @transform_2, window_bounds = array<i64: 128, 128>}, {pipeline_mode = #tpu.pipeline_mode<synchronous>, transform_indices = @transform_3, window_bounds = array<i64: 8, 128>}, {transform_indices = @transform_4, window_bounds = array<i64: 1, 8>}]} {
    %c0 = arith.constant 0 : index
    %c0_0 = arith.constant 0 : index
    %0 = vector.load %arg1[%c0, %c0_0] : memref<8x32xf32, #tpu.memory_space<vmem>>, vector<8x32xf32>
    %1 = arith.truncf %0 : vector<8x32xf32> to vector<8x32xbf16>
    %c0_1 = arith.constant 0 : index
    %c0_2 = arith.constant 0 : index
    %2 = vector.load %arg2[%c0_1, %c0_2] : memref<32x128xbf16, #tpu.memory_space<vmem>>, vector<32x128xbf16>
    %cst = arith.constant dense<0.000000e+00> : vector<8x128xf32>
    %3 = tpu.matmul %1, %2, %cst {dimension_numbers = #tpu.dot_dimension_numbers<[1], [0], [0], [1], [0, 0, 1, 1], [], []>} : vector<8x32xbf16>, vector<32x128xbf16>, vector<8x128xf32> -> vector<8x128xf32>
    %c0_3 = arith.constant 0 : index
    %c0_4 = arith.constant 0 : index
    %4 = vector.load %arg4[%c0_3, %c0_4] : memref<8x128xf32, #tpu.memory_space<vmem>>, vector<1x128xf32>
    %5 = vector.broadcast %4 : vector<1x128xf32> to vector<8x128xf32>
    %6 = arith.addf %3, %5 : vector<8x128xf32>
    %cst_5 = arith.constant 0.000000e+00 : f32
    %7 = vector.broadcast %cst_5 : f32 to vector<8x128xf32>
    %8 = arith.maximumf %6, %7 : vector<8x128xf32>
    %9 = arith.truncf %8 : vector<8x128xf32> to vector<8x128xbf16>
    %c0_6 = arith.constant 0 : index
    %c0_7 = arith.constant 0 : index
    %10 = vector.load %arg3[%c0_6, %c0_7] : memref<128x128xbf16, #tpu.memory_space<vmem>>, vector<128x128xbf16>
    %cst_8 = arith.constant dense<0.000000e+00> : vector<8x128xf32>
    %11 = tpu.matmul %9, %10, %cst_8 {dimension_numbers = #tpu.dot_dimension_numbers<[1], [0], [0], [1], [0, 0, 1, 1], [], []>} : vector<8x128xbf16>, vector<128x128xbf16>, vector<8x128xf32> -> vector<8x128xf32>
    %c1 = arith.constant 1 : index
    %c0_9 = arith.constant 0 : index
    %12 = vector.load %arg4[%c1, %c0_9] : memref<8x128xf32, #tpu.memory_space<vmem>>, vector<1x128xf32>
    %13 = vector.broadcast %12 : vector<1x128xf32> to vector<8x128xf32>
    %14 = arith.addf %11, %13 : vector<8x128xf32>
    %cst_10 = arith.constant 0.000000e+00 : f32
    %15 = vector.broadcast %cst_10 : f32 to vector<8x128xf32>
    %16 = arith.maximumf %14, %15 : vector<8x128xf32>
    %c0_11 = arith.constant 0 : index
    %c0_12 = arith.constant 0 : index
    %17 = vector.load %arg4[%c0_11, %c0_12] : memref<8x128xf32, #tpu.memory_space<vmem>>, vector<8x128xf32>
    %cst_13 = arith.constant dense<0.000000e+00> : vector<8x8xf32>
    %18 = tpu.matmul %17, %16, %cst_13 {dimension_numbers = #tpu.dot_dimension_numbers<[1], [1], [0], [0], [0, 0, 1, 0], [], []>} : vector<8x128xf32>, vector<8x128xf32>, vector<8x8xf32> -> vector<8x8xf32>
    %19 = vector.extract_strided_slice %18 {offsets = [2, 0], sizes = [1, 8], strides = [1, 1]} : vector<8x8xf32> to vector<1x8xf32>
    %c3 = arith.constant 3 : index
    %c0_14 = arith.constant 0 : index
    %20 = vector.load %arg4[%c3, %c0_14] : memref<8x128xf32, #tpu.memory_space<vmem>>, vector<1x1xf32>
    %21 = vector.broadcast %20 : vector<1x1xf32> to vector<1x8xf32>
    %22 = arith.addf %19, %21 : vector<1x8xf32>
    %23 = arith.negf %22 : vector<1x8xf32>
    %24 = math.exp %23 : vector<1x8xf32>
    %cst_15 = arith.constant 1.000000e+00 : f32
    %25 = vector.broadcast %cst_15 : f32 to vector<1x8xf32>
    %26 = arith.addf %25, %24 : vector<1x8xf32>
    %27 = arith.divf %25, %26 : vector<1x8xf32>
    %c0_16 = arith.constant 0 : index
    %c0_17 = arith.constant 0 : index
    %28 = vector.load %arg5[%c0_16, %c0_17] : memref<1x8xf32, #tpu.memory_space<vmem>>, vector<1x8xf32>
    tpu.vector_store %arg5[%c0_16, %c0_17], %27 {strides = array<i32>} : memref<1x8xf32, #tpu.memory_space<vmem>>, vector<1x8xf32>,
    return
  }
  func.func @transform_0(%arg0: i32) -> (i32, i32) {
    %c0_i32 = arith.constant 0 : i32
    %c0_i32_0 = arith.constant 0 : i32
    return %arg0, %c0_i32 : i32, i32
  }
  func.func @transform_1(%arg0: i32) -> (i32, i32) {
    %c0_i32 = arith.constant 0 : i32
    %c0_i32_0 = arith.constant 0 : i32
    %c0_i32_1 = arith.constant 0 : i32
    return %c0_i32, %c0_i32_0 : i32, i32
  }
  func.func @transform_2(%arg0: i32) -> (i32, i32) {
    %c0_i32 = arith.constant 0 : i32
    %c0_i32_0 = arith.constant 0 : i32
    %c0_i32_1 = arith.constant 0 : i32
    return %c0_i32, %c0_i32_0 : i32, i32
  }
  func.func @transform_3(%arg0: i32) -> (i32, i32) {
    %c0_i32 = arith.constant 0 : i32
    %c0_i32_0 = arith.constant 0 : i32
    %c0_i32_1 = arith.constant 0 : i32
    return %c0_i32, %c0_i32_0 : i32, i32
  }
  func.func @transform_4(%arg0: i32) -> (i32, i32) {
    %c0_i32 = arith.constant 0 : i32
    %c0_i32_0 = arith.constant 0 : i32
    return %c0_i32, %arg0 : i32, i32
  }
}

</mosaic_0001>

<bundles_post_ra>
// kernel: meta_model_forward.1
= control target key start
LH: loop header
LB: loop body
LE: loop exit
PB: predicated region body
PF: predicated region fallthrough
CT: control target
= control target key end

     0   :  { %9 = vsyncpa [#allocation3], 0  ;;  %s622_s0 = inlined_call_operand.hbm [shape: f32[8,32], index: 0, kind: input, shape index: {}]   ;;  %s623_s1 = inlined_call_operand.hbm [shape: bf16[32,128], index: 1, kind: input, shape index: {}]   ;;  %s624_s2 = inlined_call_operand.hbm [shape: bf16[128,128], index: 2, kind: input, shape index: {}]   ;;  %s625_s3 = inlined_call_operand.vmem [shape: f32[8,128], index: 3, kind: input, shape index: {}]   ;;  %s626_s4 = inlined_call_operand.hbm [shape: f32[1,8], index: 4, kind: output, shape index: {}]  }
   0x1   :  { %10 = vsyncpa [#allocation6], 0 }
   0x2   :  { %11 = vsyncpa [#allocation4], 0  ;;  %s519_s15 = smov [#allocation5]   ;;  %s425_s19 = scalar_lea.hbm %s623_s1, 256 }
   0x3   :  { %s27_s16 = sshll.u32 %s519_s15, 4  ;;  %p426_p0 = scmp.ne.s32.totalorder %s623_s1, %s425_s19  ;;  %s28_s16 = int_to_ptr.vmem [resolvable:$true] %s27_s16 }
   0x4   :  { %p429_p1 = scmp.lt.u32.totalorder %s425_s19, %s623_s1 }
   0x6   :  { %p431_p2 = pnand %p429_p1, %p426_p0 }
   0x8   :  { %434 = shalt.err (!%p431_p2)
}
   0x9   :  { %s435_s24 = scalar_lea.vmem %s28_s16, 256  ;;  %p440_p4 = scmp.lt.s32.totalorder %s28_s16, %s28_s16 }
   0xa   :  { %p436_p3 = scmp.ne.s32.totalorder %s28_s16, %s435_s24  ;;  %p441_p5 = scmp.lt.s32.totalorder %s435_s24, %s435_s24 }
   0xc   :  { %p442_p6 = por %p441_p5, %p440_p4 }
   0xe   :  { %p443_p7 = pnand %p442_p6, %p436_p3 }
  0x10   :  { %446 = shalt.err (!%p443_p7)
}
  0x11   :  { %s520_s25 = smov 64   ;;  %s521_s26 = smov 4  }
  0x12   :  { %33 = dma.hbm_to_vmem [thread:$0]  %s623_s1, 256, %s28_s16, [#allocation6], %s520_s25, %s520_s25, %s521_s26  }
  0x13   :  { %s522_s29 = smov [#allocation2]   ;;  %s523_s5 = smov [#allocation7]  }
  0x14   :  { %s18_s30 = sshll.u32 %s522_s29, 4  ;;  %s39_s6 = sshll.u32 %s523_s5, 4  ;;  %s19_s30 = int_to_ptr.vmem [resolvable:$true] %s18_s30  ;;  %s40_s6 = int_to_ptr.vmem [resolvable:$true] %s39_s6 }
  0x15   :  { %s447_s9 = scalar_lea.hbm %s622_s0, 128 }
  0x16   :  { %p448_p8 = scmp.ne.s32.totalorder %s622_s0, %s447_s9  ;;  %p451_p9 = scmp.lt.u32.totalorder %s447_s9, %s622_s0 }
  0x18   :  { %p453_p10 = pnand %p451_p9, %p448_p8 }
  0x1a   :  { %456 = shalt.err (!%p453_p10)
}
  0x1b   :  { %s457_s1 = scalar_lea.vmem %s19_s30, 128  ;;  %p462_p12 = scmp.lt.s32.totalorder %s19_s30, %s19_s30 }
  0x1c   :  { %p458_p11 = scmp.ne.s32.totalorder %s19_s30, %s457_s1  ;;  %p463_p13 = scmp.lt.s32.totalorder %s457_s1, %s457_s1 }
  0x1e   :  { %p464_p0 = por %p463_p13, %p462_p12 }
  0x20   :  { %p465_p1 = pnand %p464_p0, %p458_p11 }
  0x22   :  { %468 = shalt.err (!%p465_p1)
}
  0x23   :  { %21 = dma.hbm_to_vmem [thread:$0]  %s622_s0, 128, %s19_s30, [#allocation3]  }
  0x24   :  { %s469_s18 = scalar_lea.hbm %s624_s2, 1024 }
  0x25   :  { %p470_p2 = scmp.ne.s32.totalorder %s624_s2, %s469_s18  ;;  %p473_p3 = scmp.lt.u32.totalorder %s469_s18, %s624_s2 }
  0x27   :  { %p475_p4 = pnand %p473_p3, %p470_p2 }
  0x29   :  { %478 = shalt.err (!%p475_p4)
}
  0x2a   :  { %s479_s23 = scalar_lea.vmem %s40_s6, 1024  ;;  %p484_p6 = scmp.lt.s32.totalorder %s40_s6, %s40_s6 }
  0x2b   :  { %p480_p5 = scmp.ne.s32.totalorder %s40_s6, %s479_s23  ;;  %p485_p7 = scmp.lt.s32.totalorder %s479_s23, %s479_s23 }
  0x2d   :  { %p486_p8 = por %p485_p7, %p484_p6 }
  0x2f   :  { %p487_p9 = pnand %p486_p8, %p480_p5 }
  0x31   :  { %490 = shalt.err (!%p487_p9)
}
  0x32   :  { %45 = dma.hbm_to_vmem [thread:$0]  %s624_s2, 1024, %s40_s6, [#allocation6], %s520_s25, %s520_s25, %s521_s26  }
  0x33   :  { %513 = dma.done.wait [#allocation3], 128  }
  0x34   :  { %514 = vsyncadd [#allocation3], 4294967168 }
  0x35   :  { %515 = dma.done.wait [#allocation6], 1280  }
  0x36   :  { %516 = vsyncadd [#allocation6], 4294966016  ;;  %v524_v0 = vmov 0.0   ;;  %vm525_vm0 = vmmov 0   ;;  %v411_v1 = vld [vmem:[#allocation5] sm:$0xff]   ;;  %v412_v2 = vld [vmem:[#allocation5 + $0x8] sm:$0xff]  }
  0x37   :  { %368 = vmatprep.subr.bf16.mxu0 %v524_v0  ;;  %372 = vmatprep.mubr.msk.bf16.mxu0 %vm525_vm0, %v524_v0  ;;  %v58_v3 = vld [vmem:[#allocation2] sm:$0xff]  ;;  %v413_v4 = vld [vmem:[#allocation7] sm:$0xff]   ;;  %vm81_vm1 = vcmask 261120   ;;  %v415_v7 = vld [vmem:[#allocation7 + $0x10] sm:$0xff]   ;;  %v526_v22 = vmov 0   ;;  %s527_s6 = smov [#allocation8]  }
  0x38   :  { %376 = vmatprep.subr.bf16.mxu1 %v524_v0  ;;  %392 = vmatprep.mubr.msk.bf16.mxu1 %vm525_vm0, %v524_v0  ;;  %v59_v5 = vpack.c.bf16 %v58_v3, %v58_v3  ;;  %v414_v6 = vld [vmem:[#allocation7 + $0x8] sm:$0xff]   ;;  %v416_v8 = vld [vmem:[#allocation7 + $0x18] sm:$0xff]   ;;  %v417_v9 = vld [vmem:[#allocation7 + $0x20] sm:$0xff]   ;;  %s330_s7 = sshll.u32 %s527_s6, 4  ;;  %vm322_vm2 = vcmask 59394   ;;  %s331_s7 = int_to_ptr.vmem [resolvable:$true] %s330_s7 }
  0x39   :  { %369 = vmatpush3.bf16.msra.mxu0 %v411_v1  ;;  %377 = vmatpush3.bf16.msra.mxu1 %v413_v4  ;;  %v418_v10 = vld [vmem:[#allocation7 + $0x28] sm:$0xff]   ;;  %v419_v11 = vld [vmem:[#allocation7 + $0x30] sm:$0xff]   ;;  %v420_v12 = vld [vmem:[#allocation7 + $0x38] sm:$0xff]   ;;  %s491_s8 = scalar_lea.vmem %s331_s7, 16  ;;  %p496_p11 = scmp.lt.s32.totalorder %s331_s7, %s331_s7 }
  0x3a   :  { %370 = vmatprep.subr.bf16.mxu0 %v524_v0  ;;  %378 = vmatprep.subr.bf16.mxu1 %v524_v0  ;;  %v340_v13 = vld [vmem:[%s625_s3] ss:$0 sm:$0xff]  ;;  %v308_v21 = vld [vmem:[%s625_s3 + $0x3] sm:$0x1]  ;;  %v344_v23 = vld [vmem:[%s625_s3 + $0x1] ss:$0 sm:$0xff]  ;;  %p492_p10 = scmp.ne.s32.totalorder %s331_s7, %s491_s8 }
  0x3b   :  { %410 = vset.pattern.permute.xlu0 %v526_v22  ;;  %v237_v30 = vld [vmem:[%s625_s3] sm:$0xff]  ;;  %s495_s3 = scalar_lea.vmem %s331_s7, 32 }
  0x3c   :  { %311 = vperm.xlu0 %410, %v308_v21   ;;  %p497_p12 = scmp.lt.s32.totalorder %s495_s3, %s491_s8 }
  0x3d   :  { %371 = vmatpush3.bf16.msra.mxu0 %v412_v2  ;;  %379 = vmatpush3.bf16.msra.mxu1 %v414_v6 }
  0x3e   :  { %396 = vmatprep.subr.mxu0 %v524_v0  ;;  %380 = vmatprep.subr.bf16.mxu1 %v524_v0  ;;  %p498_p13 = por %p497_p12, %p496_p11 }
  0x40   :  { %373 = vmatmul.mubr.msk.bf16.vlgmr.msra.gmra.mrb[0].mxu0 %vm81_vm1, %v59_v5  ;;  %p499_p0 = pnand %p498_p13, %p492_p10 }
  0x41   :  { %398 = vmatprep.mubr.msk.f32.mxu0 %vm525_vm0, %v524_v0  ;;  %381 = vmatpush3.bf16.msra.mxu1 %v415_v7 }
  0x42   :  { %382 = vmatprep.subr.bf16.mxu1 %v524_v0 }
  0x45   :  { %383 = vmatpush3.bf16.msra.mxu1 %v416_v8 }
  0x46   :  { %384 = vmatprep.subr.bf16.mxu1 %v524_v0 }
  0x49   :  { %385 = vmatpush3.bf16.msra.mxu1 %v417_v9 }
  0x4a   :  { %386 = vmatprep.subr.bf16.mxu1 %v524_v0 }
  0x4d   :  { %387 = vmatpush3.bf16.msra.mxu1 %v418_v10 }
  0x4e   :  { %388 = vmatprep.subr.bf16.mxu1 %v524_v0 }
  0x51   :  { %389 = vmatpush3.bf16.msra.mxu1 %v419_v11 }
  0x52   :  { %390 = vmatprep.subr.bf16.mxu1 %v524_v0 }
  0x55   :  { %391 = vmatpush3.bf16.msra.mxu1 %v420_v12 }
  0xbb   :  { %v312_v31 = vpop.permute.xlu0 %311 }
  0xbc   :  { %v313_v32 = vrot.slane %v312_v31, 6 }
 0x113   :  { %v119_v14 = vpop.f32.mrb[0].mxu0 }
 0x114   :  { %v120_v15 = vadd.f32 %v340_v13, %v119_v14  ;;  %v374_v16 = vpop.f32.mrb[1].mxu0 }
 0x115   :  { %v122_v17 = vpop.f32.mrb[2].mxu0 }
 0x116   :  { %v125_v18 = vmax.f32 %v120_v15, 0.0  ;;  %v375_v19 = vpop.f32.mrb[3].mxu0 }
 0x118   :  { %v126_v20 = vpack.c.bf16 %v125_v18, %v125_v18 }
 0x11a   :  { %393 = vmatmul.mubr.bf16.vlgmr.msra.gmra.mrb[0].mxu1 %v126_v20 }
 0x1ed   :  { %v230_v24 = vpop.f32.mrb[0].mxu1 }
 0x1ee   :  { %v231_v25 = vadd.f32 %v344_v23, %v230_v24  ;;  %v394_v26 = vpop.f32.mrb[1].mxu1 }
 0x1ef   :  { %v233_v27 = vpop.f32.mrb[2].mxu1 }
 0x1f0   :  { %v236_v28 = vmax.f32 %v231_v25, 0.0  ;;  %v395_v29 = vpop.f32.mrb[3].mxu1 }
 0x1f2   :  { %397 = vmatpush3.xpose.msra.mxu0 %v236_v28 }
 0x1f5   :  { %399 = vmatmul.mubr.f32.vlgmr.msra.gmra.mrb[4].mxu0 %v237_v30 }
 0x2c8   :  { %v304_v33 = vpop.f32.mrb[4].mxu0 }
 0x2c9   :  { %v315_v34 = vadd.f32 %v313_v32, %v304_v33  ;;  %v400_v35 = vpop.f32.mrb[5].mxu0 }
 0x2cb   :  { %v353_v36 = vmul.f32 -1.442695, %v315_v34 }
 0x2cd   :  { %421 = vpow2.f32 %v353_v36 }
 0x2d7   :  { %v422_v37 = vpop.eup %421 }
 0x2d8   :  { %v319_v38 = vadd.f32 1.0, %v422_v37 }
 0x2da   :  { %423 = vrcp.f32 %v319_v38 }
 0x2e4   :  { %v424_v39 = vpop.eup %423 }
 0x2e5   :  { %323 = vst.msk [vmem:[#allocation8 - $0x2] sm:$0x4] %vm322_vm2, %v424_v39 }
 0x2e6   :  { %502 = shalt.err (!%p499_p0)
}
 0x2e7   :  { %s503_s11 = scalar_lea.hbm %s626_s4, 16 }
 0x2e8   :  { %p504_p1 = scmp.ne.s32.totalorder %s626_s4, %s503_s11  ;;  %p507_p2 = scmp.lt.u32.totalorder %s503_s11, %s626_s4 }
 0x2ea   :  { %p509_p3 = pnand %p507_p2, %p504_p1 }
 0x2ec   :  { %512 = shalt.err (!%p509_p3)
}
 0x2ed   :  { %333 = dma.vmem_to_hbm [thread:$0]  %s331_s7, 16, %s626_s4, [#allocation4]  }
 0x2ee   :  { %517 = dma.done.wait [#allocation4], 16  }
 0x2ef   :  { %518 = vsyncadd [#allocation4], 4294967280 }
 0x2f0   :  { %337 = vsyncpa [#allocation3], 1 }
 0x2f1   :  { %338 = vsyncpa [#allocation6], 1 }
 0x2f2   :  { %339 = vsyncpa [#allocation4], 1 }

</bundles_post_ra>
